<compile_context>
chip_gen: v5e
topology: v5e:2x2
jax: 0.10.0
libtpu: 0.0.40
codegen_flags: <defaults>
</compile_context>

<pallas_src>
import jax
import jax.numpy as jnp
from jax.experimental import pallas as pl
from jax.experimental.pallas import tpu as pltpu

_LANE = 128
_SUBLANE = 8
_TB_CAP = 2048  # rows per grid step; ~2 MB of double-buffered x/out at f32


def _round_up(n, m):
    return ((n + m - 1) // m) * m


def _cdiv(a, b):
    return -(-a // b)


# ---------------------------------------------------------------------------
# Kernel
# ---------------------------------------------------------------------------
def _net_kernel(x_ref, w1_ref, b1_ref, w2_ref, b2_ref, o_ref):
    # x_ref:  (TB, NS_P)   VMEM  (batch tile, padded features)
    # w1_ref: (NS_P, H_P)  VMEM  (resident across the grid)
    # b1_ref: (1, H_P)     VMEM
    # w2_ref: (H_P, A_P)   VMEM
    # b2_ref: (1, A_P)     VMEM
    # o_ref:  (TB, A_P)    VMEM  (lane-dense: A_P is a multiple of 128)
    h = jnp.dot(x_ref[...], w1_ref[...], preferred_element_type=jnp.float32)
    h = jnp.maximum(h + b1_ref[...], 0.0)  # ReLU
    out = jnp.dot(h, w2_ref[...], preferred_element_type=jnp.float32) + b2_ref[...]
    o_ref[...] = out.astype(o_ref.dtype)


# ---------------------------------------------------------------------------
# One-time parameter packing (hoisted out of the per-step path)
# ---------------------------------------------------------------------------
def pack_params(w1, b1, w2, b2):
    """Zero-pad a single net's params to TPU-friendly shapes.  Call ONCE."""
    w1 = jnp.asarray(w1, jnp.float32)
    b1 = jnp.asarray(b1, jnp.float32)
    w2 = jnp.asarray(w2, jnp.float32)
    b2 = jnp.asarray(b2, jnp.float32)
    n_states, hidden = w1.shape
    n_actions = w2.shape[1]
    ns_p = _round_up(n_states, _SUBLANE)
    h_p = _round_up(hidden, _LANE)
    a_p = _round_up(n_actions, _LANE)

    w1p = jnp.pad(w1, ((0, ns_p - n_states), (0, h_p - hidden)))
    b1p = jnp.pad(b1.reshape(1, hidden), ((0, 0), (0, h_p - hidden)))
    w2p = jnp.pad(w2, ((0, h_p - hidden), (0, a_p - n_actions)))
    b2p = jnp.pad(b2.reshape(1, n_actions), ((0, 0), (0, a_p - n_actions)))
    return (w1p, b1p, w2p, b2p), n_actions


def pack_pair_params(eval_params, target_params):
    """Pack eval + target nets into one set of params for a single pallas_call.

    Hidden units are concatenated (eval in [0, H_P), target in [H_P, 2*H_P)).
    Both output heads share ONE 128-lane output: eval Q in lanes [0, A),
    target Q in lanes [64, 64+A).  Call ONCE; reuse every learn step (rebuild
    only when the target net is refreshed).
    """
    w1e, b1e, w2e, b2e = (jnp.asarray(p, jnp.float32) for p in eval_params)
    w1t, b1t, w2t, b2t = (jnp.asarray(p, jnp.float32) for p in target_params)
    n_states, hidden = w1e.shape
    n_actions = w2e.shape[1]
    assert n_actions <= _LANE // 2, "pair packing needs N_ACTIONS <= 64"
    ns_p = _round_up(n_states, _SUBLANE)
    h_p = _round_up(hidden, _LANE)
    tgt_off = _LANE // 2

    w1c = jnp.zeros((ns_p, 2 * h_p), jnp.float32)
    w1c = (w1c.at[:n_states, :hidden].set(w1e)
               .at[:n_states, h_p:h_p + hidden].set(w1t))
    b1c = jnp.zeros((1, 2 * h_p), jnp.float32)
    b1c = (b1c.at[:, :hidden].set(b1e.reshape(1, hidden))
               .at[:, h_p:h_p + hidden].set(b1t.reshape(1, hidden)))

    w2c = jnp.zeros((2 * h_p, _LANE), jnp.float32)
    w2c = (w2c.at[:hidden, :n_actions].set(w2e)
               .at[h_p:h_p + hidden, tgt_off:tgt_off + n_actions].set(w2t))
    b2c = jnp.zeros((1, _LANE), jnp.float32)
    b2c = (b2c.at[:, :n_actions].set(b2e.reshape(1, n_actions))
               .at[:, tgt_off:tgt_off + n_actions].set(b2t.reshape(1, n_actions)))
    return (w1c, b1c, w2c, b2c), n_actions, tgt_off


# ---------------------------------------------------------------------------
# Hot path
# ---------------------------------------------------------------------------
def _choose_batch_tiling(B):
    """Minimal-padding batch tiling: tb multiple of 8, capped at _TB_CAP rows.
    For B >= 1024 force >= 2 grid steps so "parallel" can use both v7x TCs."""
    b8 = _round_up(max(B, 1), _SUBLANE)
    nb = max(1, _cdiv(b8, _TB_CAP))
    if b8 >= 1024:
        nb = max(nb, 2)
    tb = _round_up(_cdiv(b8, nb), _SUBLANE)
    b_pad = nb * tb
    return tb, nb, b_pad


def _forward_padded(x, w1p, b1p, w2p, b2p):
    """Core pallas_call on already-packed params.  Returns (b_pad, A_P) f32."""
    B, n_states = x.shape
    ns_p, h_p = w1p.shape
    a_p = w2p.shape[1]
    tb, nb, b_pad = _choose_batch_tiling(B)

    xp = jnp.pad(x.astype(jnp.float32),
                 ((0, b_pad - B), (0, ns_p - n_states)))

    flops = 2 * b_pad * (ns_p * h_p + h_p * a_p)
    bytes_accessed = 4 * (b_pad * ns_p + ns_p * h_p + h_p
                          + h_p * a_p + a_p + b_pad * a_p)

    return pl.pallas_call(
        _net_kernel,
        out_shape=jax.ShapeDtypeStruct((b_pad, a_p), jnp.float32),
        grid=(nb,),
        in_specs=[
            pl.BlockSpec((tb, ns_p), lambda i: (i, 0)),    # x: tiled over batch
            pl.BlockSpec((ns_p, h_p), lambda i: (0, 0)),   # w1: resident
            pl.BlockSpec((1, h_p), lambda i: (0, 0)),      # b1: resident
            pl.BlockSpec((h_p, a_p), lambda i: (0, 0)),    # w2: resident
            pl.BlockSpec((1, a_p), lambda i: (0, 0)),      # b2: resident
        ],
        out_specs=pl.BlockSpec((tb, a_p), lambda i: (i, 0)),
        compiler_params=pltpu.CompilerParams(
            dimension_semantics=("parallel",)),
        cost_estimate=pl.CostEstimate(
            flops=flops, transcendentals=0, bytes_accessed=bytes_accessed),
    )(xp, w1p, b1p, w2p, b2p)


def net_forward_packed(x, packed, n_actions):
    """x: (B, N_STATES) -> (B, N_ACTIONS) Q-values using pre-packed params."""
    B = x.shape[0]
    if B == 0:  # B=0 would give grid=(0,); early-return instead.
        return jnp.zeros((0, n_actions), jnp.float32)
    out = _forward_padded(x, *packed)
    return out[:B, :n_actions]          # single fused slice


def net_forward_pair_packed(x, packed_pair, n_actions, tgt_off):
    """(q_eval, q_target), each (B, N_ACTIONS), in ONE pallas_call."""
    B = x.shape[0]
    if B == 0:
        z = jnp.zeros((0, n_actions), jnp.float32)
        return z, z
    out = _forward_padded(x, *packed_pair)
    return out[:B, :n_actions], out[:B, tgt_off:tgt_off + n_actions]


# Convenience wrappers (pack per call; prefer the *_packed forms in a loop).
def net_forward(x, w1, b1, w2, b2):
    packed, n_actions = pack_params(w1, b1, w2, b2)
    return net_forward_packed(x, packed, n_actions)


def net_forward_pair(x, eval_params, target_params):
    packed, n_actions, tgt_off = pack_pair_params(eval_params, target_params)
    return net_forward_pair_packed(x, packed, n_actions, tgt_off)


# ---------------------------------------------------------------------------
# Init + reference
# ---------------------------------------------------------------------------
def init_params(key, n_states, n_actions, hidden=60):
    """Mirror the PyTorch module: weights ~ N(0, 0.1); biases use the
    nn.Linear default U(-1/sqrt(fan_in), 1/sqrt(fan_in)).  Weights are stored
    as (in_features, out_features) = transpose of the torch layout."""
    k1, k2, k3, k4 = jax.random.split(key, 4)
    w1 = 0.1 * jax.random.normal(k1, (n_states, hidden), dtype=jnp.float32)
    bound1 = 1.0 / jnp.sqrt(jnp.float32(n_states))
    b1 = jax.random.uniform(k2, (1, hidden), minval=-bound1, maxval=bound1,
                            dtype=jnp.float32)
    w2 = 0.1 * jax.random.normal(k3, (hidden, n_actions), dtype=jnp.float32)
    bound2 = 1.0 / jnp.sqrt(jnp.float32(hidden))
    b2 = jax.random.uniform(k4, (1, n_actions), minval=-bound2, maxval=bound2,
                            dtype=jnp.float32)
    return w1, b1, w2, b2


def _ref_forward(x, w1, b1, w2, b2):
    return jnp.maximum(x @ w1 + b1, 0.0) @ w2 + b2


if __name__ == "__main__":
    # CartPole-like environment: N_STATES=4, N_ACTIONS=2.
    N_STATES = 4
    N_ACTIONS = 2
    HIDDEN = 60

    key = jax.random.PRNGKey(0)
    kx1, kx2, kx3, kpe, kpt = jax.random.split(key, 5)
    eval_params = init_params(kpe, N_STATES, N_ACTIONS, HIDDEN)
    target_params = init_params(kpt, N_STATES, N_ACTIONS, HIDDEN)

    # Pack ONCE (hoisted out of the per-step path), jit the packed forwards so
    # the x pad + output slice fuse with the custom call.
    eval_packed, na = pack_params(*eval_params)
    pair_packed, na_pair, tgt_off = pack_pair_params(eval_params, target_params)
    single_fwd = jax.jit(lambda x, p: net_forward_packed(x, p, na))
    pair_fwd = jax.jit(lambda x, p: net_forward_pair_packed(x, p, na_pair, tgt_off))

    ok = True

    # 1) Single-net forward on a tiny action-selection batch (B=2).
    x_small = jax.random.normal(kx1, (2, N_STATES), dtype=jnp.float32)
    q_small = jax.block_until_ready(single_fwd(x_small, eval_packed))
    ref_small = _ref_forward(x_small, *eval_params)
    ok &= q_small.shape == (2, N_ACTIONS)
    ok &= bool(jnp.allclose(q_small, ref_small, atol=1e-5, rtol=1e-5))

    # 2) Fused eval + target nets on a replay batch (B=32) in one pallas_call.
    x_batch = jax.random.normal(kx2, (32, N_STATES), dtype=jnp.float32)
    q_eval, q_tgt = pair_fwd(x_batch, pair_packed)
    q_eval = jax.block_until_ready(q_eval)
    q_tgt = jax.block_until_ready(q_tgt)
    ok &= q_eval.shape == (32, N_ACTIONS) and q_tgt.shape == (32, N_ACTIONS)
    ok &= bool(jnp.allclose(q_eval, _ref_forward(x_batch, *eval_params),
                            atol=1e-5, rtol=1e-5))
    ok &= bool(jnp.allclose(q_tgt, _ref_forward(x_batch, *target_params),
                            atol=1e-5, rtol=1e-5))

    # 3) Larger batch: minimal-padding tiling picks nb=2, tb=520 (pads only
    #    1040 -> 1040), exercising the multi-step grid / megacore path.
    x_big = jax.random.normal(kx3, (1040, N_STATES), dtype=jnp.float32)
    q_big = jax.block_until_ready(single_fwd(x_big, eval_packed))
    ok &= q_big.shape == (1040, N_ACTIONS)
    ok &= bool(jnp.allclose(q_big, _ref_forward(x_big, *eval_params),
                            atol=1e-5, rtol=1e-5))

    # 4) Convenience (per-call packing) API still works.
    q_conv = jax.block_until_ready(net_forward(x_small, *eval_params))
    ok &= bool(jnp.allclose(q_conv, ref_small, atol=1e-5, rtol=1e-5))

    # 5) B=0 edge case is guarded (no grid=(0,) launch).
    q_empty = net_forward_packed(jnp.zeros((0, N_STATES), jnp.float32),
                                 eval_packed, na)
    ok &= q_empty.shape == (0, N_ACTIONS)

    assert ok, "Pallas Net forward does not match the JAX reference"
    print("KERNEL_OK")
</pallas_src>

<mosaic_0001>
module attributes {stable_mosaic.version = 11 : i64} {
  func.func @_net_kernel(%arg0: i32, %arg1: memref<8x8xf32, #tpu.memory_space<vmem>>, %arg2: memref<8x128xf32, #tpu.memory_space<vmem>>, %arg3: memref<1x128xf32, #tpu.memory_space<vmem>>, %arg4: memref<128x128xf32, #tpu.memory_space<vmem>>, %arg5: memref<1x128xf32, #tpu.memory_space<vmem>>, %arg6: memref<8x128xf32, #tpu.memory_space<vmem>>) attributes {dimension_semantics = [#tpu.dimension_semantics<parallel>], iteration_bounds = array<i64: 1>, scalar_prefetch = 0 : i64, scratch_operands = 0 : i64, tpu.core_type = #tpu.core_type<tc>, window_params = [{transform_indices = @transform_0, window_bounds = array<i64: 8, 8>}, {pipeline_mode = #tpu.pipeline_mode<synchronous>, transform_indices = @transform_1, window_bounds = array<i64: 8, 128>}, {pipeline_mode = #tpu.pipeline_mode<synchronous>, transform_indices = @transform_2, window_bounds = array<i64: 1, 128>}, {pipeline_mode = #tpu.pipeline_mode<synchronous>, transform_indices = @transform_3, window_bounds = array<i64: 128, 128>}, {pipeline_mode = #tpu.pipeline_mode<synchronous>, transform_indices = @transform_4, window_bounds = array<i64: 1, 128>}, {transform_indices = @transform_5, window_bounds = array<i64: 8, 128>}]} {
    %c0 = arith.constant 0 : index
    %c0_0 = arith.constant 0 : index
    %0 = vector.load %arg1[%c0, %c0_0] : memref<8x8xf32, #tpu.memory_space<vmem>>, vector<8x8xf32>
    %c0_1 = arith.constant 0 : index
    %c0_2 = arith.constant 0 : index
    %1 = vector.load %arg2[%c0_1, %c0_2] : memref<8x128xf32, #tpu.memory_space<vmem>>, vector<8x128xf32>
    %cst = arith.constant dense<0.000000e+00> : vector<8x128xf32>
    %2 = tpu.matmul %0, %1, %cst {dimension_numbers = #tpu.dot_dimension_numbers<[1], [0], [0], [1], [0, 0, 1, 1], [], []>} : vector<8x8xf32>, vector<8x128xf32>, vector<8x128xf32> -> vector<8x128xf32>
    %c0_3 = arith.constant 0 : index
    %c0_4 = arith.constant 0 : index
    %3 = vector.load %arg3[%c0_3, %c0_4] : memref<1x128xf32, #tpu.memory_space<vmem>>, vector<1x128xf32>
    %4 = vector.broadcast %3 : vector<1x128xf32> to vector<8x128xf32>
    %5 = arith.addf %2, %4 : vector<8x128xf32>
    %cst_5 = arith.constant 0.000000e+00 : f32
    %6 = vector.broadcast %cst_5 : f32 to vector<8x128xf32>
    %7 = arith.maximumf %5, %6 : vector<8x128xf32>
    %c0_6 = arith.constant 0 : index
    %c0_7 = arith.constant 0 : index
    %8 = vector.load %arg4[%c0_6, %c0_7] : memref<128x128xf32, #tpu.memory_space<vmem>>, vector<128x128xf32>
    %cst_8 = arith.constant dense<0.000000e+00> : vector<8x128xf32>
    %9 = tpu.matmul %7, %8, %cst_8 {dimension_numbers = #tpu.dot_dimension_numbers<[1], [0], [0], [1], [0, 0, 1, 1], [], []>} : vector<8x128xf32>, vector<128x128xf32>, vector<8x128xf32> -> vector<8x128xf32>
    %c0_9 = arith.constant 0 : index
    %c0_10 = arith.constant 0 : index
    %10 = vector.load %arg5[%c0_9, %c0_10] : memref<1x128xf32, #tpu.memory_space<vmem>>, vector<1x128xf32>
    %11 = vector.broadcast %10 : vector<1x128xf32> to vector<8x128xf32>
    %12 = arith.addf %9, %11 : vector<8x128xf32>
    %c0_11 = arith.constant 0 : index
    %c0_12 = arith.constant 0 : index
    %13 = vector.load %arg6[%c0_11, %c0_12] : memref<8x128xf32, #tpu.memory_space<vmem>>, vector<8x128xf32>
    tpu.vector_store %arg6[%c0_11, %c0_12], %12 {strides = array<i32>} : memref<8x128xf32, #tpu.memory_space<vmem>>, vector<8x128xf32>,
    return
  }
  func.func @transform_0(%arg0: i32) -> (i32, i32) {
    %c0_i32 = arith.constant 0 : i32
    %c0_i32_0 = arith.constant 0 : i32
    return %arg0, %c0_i32 : i32, i32
  }
  func.func @transform_1(%arg0: i32) -> (i32, i32) {
    %c0_i32 = arith.constant 0 : i32
    %c0_i32_0 = arith.constant 0 : i32
    %c0_i32_1 = arith.constant 0 : i32
    return %c0_i32, %c0_i32_0 : i32, i32
  }
  func.func @transform_2(%arg0: i32) -> (i32, i32) {
    %c0_i32 = arith.constant 0 : i32
    %c0_i32_0 = arith.constant 0 : i32
    %c0_i32_1 = arith.constant 0 : i32
    return %c0_i32, %c0_i32_0 : i32, i32
  }
  func.func @transform_3(%arg0: i32) -> (i32, i32) {
    %c0_i32 = arith.constant 0 : i32
    %c0_i32_0 = arith.constant 0 : i32
    %c0_i32_1 = arith.constant 0 : i32
    return %c0_i32, %c0_i32_0 : i32, i32
  }
  func.func @transform_4(%arg0: i32) -> (i32, i32) {
    %c0_i32 = arith.constant 0 : i32
    %c0_i32_0 = arith.constant 0 : i32
    %c0_i32_1 = arith.constant 0 : i32
    return %c0_i32, %c0_i32_0 : i32, i32
  }
  func.func @transform_5(%arg0: i32) -> (i32, i32) {
    %c0_i32 = arith.constant 0 : i32
    %c0_i32_0 = arith.constant 0 : i32
    return %arg0, %c0_i32 : i32, i32
  }
}

</mosaic_0001>

<bundles_post_ra>
// kernel: _lambda_.1
= control target key start
LH: loop header
LB: loop body
LE: loop exit
PB: predicated region body
PF: predicated region fallthrough
CT: control target
= control target key end

     0   :  { %10 = vsyncpa [#allocation3], 0  ;;  %s145_s21 = smov [#allocation2]   ;;  %s146_s23 = smov 128   ;;  %s196_s0 = inlined_call_operand.vmem [shape: f32[8,8], index: 0, kind: input, shape index: {}]   ;;  %s197_s1 = inlined_call_operand.vmem [shape: f32[8,128], index: 1, kind: input, shape index: {}]   ;;  %s198_s2 = inlined_call_operand.vmem [shape: f32[1,128], index: 2, kind: input, shape index: {}]   ;;  %s199_s3 = inlined_call_operand.hbm [shape: f32[128,128], index: 3, kind: input, shape index: {}]   ;;  %s200_s4 = inlined_call_operand.vmem [shape: f32[1,128], index: 4, kind: input, shape index: {}]   ;;  %s201_s5 = inlined_call_operand.vmem [shape: f32[8,128], index: 5, kind: output, shape index: {}]  }
   0x1   :  { %s21_s20 = sshll.u32 %s199_s3, 4  ;;  %s23_s22 = sshll.u32 %s145_s21, 4  ;;  %s22_s20 = int_to_ptr.hbm [resolvable:$true] %s21_s20  ;;  %s24_s22 = int_to_ptr.vmem [resolvable:$true] %s23_s22 }
   0x2   :  { %s147_s24 = smov 8  }
   0x3   :  { %29 = dma.hbm_to_vmem [thread:$0]  %s22_s20, 2048, %s24_s22, [#allocation3], %s146_s23, %s146_s23, %s147_s24  }
   0x4   :  { %143 = dma.done.wait [#allocation3], 2048  }
   0x5   :  { %144 = vsyncadd [#allocation3], 4294965248  ;;  %vm42_vm0 = vcmask 64512   ;;  %v37_v0 = vld [vmem:[%s197_s1] sm:$0xff]  ;;  %v82_v2 = vld [vmem:[#allocation2 + $0x78] sm:$0xff] }
   0x6   :  { %v36_v1 = vld [vmem:[%s196_s0] sm:$0xff]  ;;  %61 = vmatpush.msra.mxu0 %v37_v0  ;;  %87 = vmatpush.msra.mxu1 %v82_v2  ;;  %v81_v3 = vld [vmem:[#allocation2 + $0x70] sm:$0xff]  ;;  %v80_v4 = vld [vmem:[#allocation2 + $0x68] sm:$0xff] }
   0x7   :  { %113 = vmatmul.msk.f32.vlgmr.msra.gmra.mxu0 %vm42_vm0, %v36_v1  ;;  %v79_v5 = vld [vmem:[#allocation2 + $0x60] sm:$0xff]  ;;  %v78_v6 = vld [vmem:[#allocation2 + $0x58] sm:$0xff]  ;;  %v77_v7 = vld [vmem:[#allocation2 + $0x50] sm:$0xff] }
   0x8   :  { %88 = vmatpush.msra.mxu1 %v81_v3  ;;  %v76_v8 = vld [vmem:[#allocation2 + $0x48] sm:$0xff]  ;;  %v75_v9 = vld [vmem:[#allocation2 + $0x40] sm:$0xff]  ;;  %v74_v10 = vld [vmem:[#allocation2 + $0x38] sm:$0xff] }
   0x9   :  { %v73_v11 = vld [vmem:[#allocation2 + $0x30] sm:$0xff]  ;;  %v72_v12 = vld [vmem:[#allocation2 + $0x28] sm:$0xff]  ;;  %v71_v13 = vld [vmem:[#allocation2 + $0x20] sm:$0xff] }
   0xa   :  { %89 = vmatpush.msra.mxu1 %v80_v4  ;;  %v70_v14 = vld [vmem:[#allocation2 + $0x18] sm:$0xff]  ;;  %v69_v15 = vld [vmem:[#allocation2 + $0x10] sm:$0xff]  ;;  %v68_v16 = vld [vmem:[#allocation2 + $0x8] sm:$0xff] }
   0xb   :  { %v67_v17 = vld [vmem:[#allocation2] sm:$0xff] }
   0xc   :  { %90 = vmatpush.msra.mxu1 %v79_v5  ;;  %v117_v18 = vld [vmem:[%s198_s2] ss:$0 sm:$0xff] }
   0xd   :  { %v118_v22 = vld [vmem:[%s200_s4] ss:$0 sm:$0xff] }
   0xe   :  { %91 = vmatpush.msra.mxu1 %v78_v6 }
  0x10   :  { %92 = vmatpush.msra.mxu1 %v77_v7 }
  0x12   :  { %93 = vmatpush.msra.mxu1 %v76_v8 }
  0x14   :  { %94 = vmatpush.msra.mxu1 %v75_v9 }
  0x16   :  { %95 = vmatpush.msra.mxu1 %v74_v10 }
  0x18   :  { %96 = vmatpush.msra.mxu1 %v73_v11 }
  0x1a   :  { %97 = vmatpush.msra.mxu1 %v72_v12 }
  0x1c   :  { %98 = vmatpush.msra.mxu1 %v71_v13 }
  0x1e   :  { %99 = vmatpush.msra.mxu1 %v70_v14 }
  0x20   :  { %100 = vmatpush.msra.mxu1 %v69_v15 }
  0x22   :  { %101 = vmatpush.msra.mxu1 %v68_v16 }
  0x24   :  { %102 = vmatpush.msra.mxu1 %v67_v17 }
  0x84   :  { %v63_v19 = vpop.f32.mrf.mxu0 }
  0x85   :  { %v64_v20 = vadd.f32 %v117_v18, %v63_v19 }
  0x87   :  { %v66_v21 = vmax.f32 %v64_v20, 0.0 }
  0x89   :  { %103 = vmatmul.f32.vlgmr.msra.gmra.mxu1 %v66_v21 }
 0x106   :  { %v104_v23 = vpop.f32.mrf.mxu1 }
 0x107   :  { %v105_v24 = vadd.f32 %v118_v22, %v104_v23 }
 0x109   :  { %107 = vst [vmem:[%s201_s5] sm:$0xff] %v105_v24 }
 0x10a   :  { %112 = vsyncpa [#allocation3], 1 }

</bundles_post_ra>
